<compile_context>
chip_gen: v7x
topology: tpu7x:2x2x1
jax: 0.10.0
libtpu: 0.0.40
codegen_flags: <defaults>
</compile_context>

<pallas_src>
import jax
import jax.numpy as jnp
from jax.experimental import pallas as pl
from jax.experimental.pallas import tpu as pltpu

_SUBLANE = 8
# (tb,32) f32 x-block is lane-padded to (tb,128) in VMEM -> tb*512 B; the
# (tb,5) out-block (or (tb,1) label block) likewise -> tb*512 B.  Double
# buffered that is ~tb*2 KiB: tb=8192 -> ~16 MiB, inside a 32 MiB scoped
# limit on every generation (v7x physical VMEM is 64 MiB, so plenty of room).
_MAX_TILE_B = 8192
_VMEM_LIMIT = 32 * 1024 * 1024


def _round_up(n, m):
    return ((n + m - 1) // m) * m


def _cdiv(a, b):
    return (a + b - 1) // b


def _pick_tile(batch):
    """Return (tile_b, padded_batch); tile_b divides padded_batch exactly.

    - batch <= 512: one big tile (splitting tiny batches across cores costs
      more in per-step overhead than a second TensorCore saves).
    - batch  > 512: at least 2 grid steps (v7x megacore), tiles as large as
      possible under the VMEM budget, padding minimized by choosing the step
      count first and sizing the tile to fit it.
    """
    b8 = _round_up(batch, _SUBLANE)
    if b8 <= 512:
        return b8, b8
    steps = max(2, _cdiv(b8, _MAX_TILE_B))
    tb = _round_up(_cdiv(b8, steps), _SUBLANE)
    return tb, tb * steps


def _softmax_kernel(x_ref, w_ref, b_ref, probs_ref):
    # Linear on the MXU, numerically-stable softmax on VPU/EUP/XLU.
    logits = jnp.dot(x_ref[...], w_ref[...],
                     preferred_element_type=jnp.float32) + b_ref[...]
    m = jnp.max(logits, axis=-1, keepdims=True)
    e = jnp.exp(logits - m)
    # Exact division (not approx reciprocal) for parity with torch.softmax;
    # this kernel is HBM/overhead bound, the extra VALU work is free.
    probs_ref[...] = e / jnp.sum(e, axis=-1, keepdims=True)


def _make_ce_kernel(batch, tile_b):
    """Fused linear + log-softmax + NLL + sum over rows (mean fused outside).

    nll_i = logsumexp(logits_i) - logits_i[y_i]; rows >= `batch` (padding)
    are masked out.  The (1,1) output block is resident across the grid
    ("arbitrary" axis) and accumulates the per-tile partial sums.
    """
    def kernel(x_ref, w_ref, b_ref, y_ref, loss_sum_ref):
        step = pl.program_id(0)

        @pl.when(step == 0)
        def _():
            loss_sum_ref[...] = jnp.zeros_like(loss_sum_ref)

        logits = jnp.dot(x_ref[...], w_ref[...],
                         preferred_element_type=jnp.float32) + b_ref[...]
        m = jnp.max(logits, axis=-1, keepdims=True)
        shifted = logits - m                                       # (TB, C)
        lse = jnp.log(jnp.sum(jnp.exp(shifted), axis=-1, keepdims=True))
        tb, c = shifted.shape
        classes = jax.lax.broadcasted_iota(jnp.int32, (tb, c), 1)
        onehot = (classes == y_ref[...]).astype(jnp.float32)       # y: (TB,1) i32
        picked = jnp.sum(onehot * shifted, axis=-1, keepdims=True)
        rows = jax.lax.broadcasted_iota(jnp.int32, (tb, 1), 0) + step * tile_b
        nll = jnp.where(rows < batch, lse - picked, 0.0)           # mask padding
        loss_sum_ref[...] += jnp.sum(nll, axis=0, keepdims=True)   # (1,1)

    return kernel


@jax.jit
def linear_softmax(x, w, b):
    """softmax(x @ w + b, axis=-1) -- TorchModel.forward(x, y=None)."""
    B, D = x.shape
    _, C = w.shape
    tb, pb = _pick_tile(B)
    assert pb % tb == 0
    num_steps = pb // tb
    if pb != B:
        x = jnp.pad(x, ((0, pb - B), (0, 0)))   # padded rows sliced off below

    cost = pl.CostEstimate(
        flops=2 * pb * D * C + 6 * pb * C,
        transcendentals=pb * C,
        bytes_accessed=pb * D * 4 + pb * C * 4 + D * C * 4 + C * 4)

    probs = pl.pallas_call(
        _softmax_kernel,
        out_shape=jax.ShapeDtypeStruct((pb, C), jnp.float32),
        grid=(num_steps,),
        in_specs=[
            pl.BlockSpec((tb, D), lambda i: (i, 0)),   # x tile streams per step
            pl.BlockSpec((D, C), lambda i: (0, 0)),    # W pinned in VMEM
            pl.BlockSpec((1, C), lambda i: (0, 0)),    # bias pinned in VMEM
        ],
        # keep C=5 on the out_spec: padding classes to 128 lanes would inflate
        # the HBM writeback 25x and make the kernel write-bound.
        out_specs=pl.BlockSpec((tb, C), lambda i: (i, 0)),
        compiler_params=pltpu.CompilerParams(
            dimension_semantics=("parallel",),          # v7x: 2 TCs share the steps
            vmem_limit_bytes=_VMEM_LIMIT),
        cost_estimate=cost,
    )(x, w, b.reshape(1, C))
    return probs[:B] if pb != B else probs


@jax.jit
def linear_cross_entropy(x, w, b, y):
    """cross_entropy(x @ w + b, y), mean reduction -- TorchModel.forward(x, y)."""
    B, D = x.shape
    _, C = w.shape
    tb, pb = _pick_tile(B)
    assert pb % tb == 0
    num_steps = pb // tb

    y2 = y.reshape(B, 1).astype(jnp.int32)
    if pb != B:
        x = jnp.pad(x, ((0, pb - B), (0, 0)))
        y2 = jnp.pad(y2, ((0, pb - B), (0, 0)))

    cost = pl.CostEstimate(
        flops=2 * pb * D * C + 10 * pb * C,
        transcendentals=pb * C,
        bytes_accessed=pb * D * 4 + pb * 4 + D * C * 4 + C * 4 + 4)

    loss_sum = pl.pallas_call(
        _make_ce_kernel(B, tb),
        out_shape=jax.ShapeDtypeStruct((1, 1), jnp.float32),
        grid=(num_steps,),
        in_specs=[
            pl.BlockSpec((tb, D), lambda i: (i, 0)),   # x tile
            pl.BlockSpec((D, C), lambda i: (0, 0)),    # W pinned
            pl.BlockSpec((1, C), lambda i: (0, 0)),    # bias pinned
            pl.BlockSpec((tb, 1), lambda i: (i, 0)),   # int32 labels
        ],
        # single resident (1,1) accumulator block across the grid -> the mean
        # is fused (no (B,1) writeback, no follow-up XLA reduction); the axis
        # must therefore be "arbitrary" (accumulator), which trades the v7x
        # dual-core split for the removed HBM pass.
        out_specs=pl.BlockSpec((1, 1), lambda i: (0, 0)),
        compiler_params=pltpu.CompilerParams(
            dimension_semantics=("arbitrary",),
            vmem_limit_bytes=_VMEM_LIMIT),
        cost_estimate=cost,
    )(x, w, b.reshape(1, C), y2)
    return loss_sum[0, 0] / jnp.float32(B)


def torch_model_forward(x, w, b, y=None):
    """Reproduces TorchModel.forward:
       - y is None  -> softmax(linear(x), axis=-1)
       - y provided -> cross_entropy(linear(x), y) with mean reduction,
                       fully fused (log-sum-exp + NLL + sum) in one pallas_call.
    """
    if y is None:
        return linear_softmax(x, w, b)
    return linear_cross_entropy(x, w, b, y)


if __name__ == "__main__":
    key = jax.random.PRNGKey(0)
    k_x, k_w, k_b, k_y = jax.random.split(key, 4)

    batch = 8
    input_size = 32        # TorchModel(input_size); nn.Linear(input_size, 5)
    num_classes = 5

    # Deterministic synthetic parameters (shapes match nn.Linear(input_size, 5),
    # weight stored transposed so the kernel computes x @ W + b).
    x = jax.random.normal(k_x, (batch, input_size), dtype=jnp.float32)
    w = jax.random.uniform(k_w, (input_size, num_classes), dtype=jnp.float32,
                           minval=-1.0, maxval=1.0) / jnp.sqrt(float(input_size))
    b = jax.random.uniform(k_b, (num_classes,), dtype=jnp.float32,
                           minval=-0.1, maxval=0.1)
    y = jax.random.randint(k_y, (batch,), 0, num_classes, dtype=jnp.int32)

    # Inference path: softmax probabilities.
    probs = jax.block_until_ready(torch_model_forward(x, w, b, y=None))

    # Training path: scalar cross-entropy loss (fused, mean folded in-kernel).
    loss = jax.block_until_ready(torch_model_forward(x, w, b, y=y))

    # Pure-JAX reference.
    ref_logits = x @ w + b
    ref_probs = jax.nn.softmax(ref_logits, axis=-1)
    ref_loss = -jnp.mean(
        jnp.take_along_axis(jax.nn.log_softmax(ref_logits, axis=-1),
                            y[:, None], axis=-1))

    assert probs.shape == (batch, num_classes)
    assert loss.shape == ()
    assert jnp.allclose(jnp.sum(probs, axis=-1), 1.0, atol=1e-5)
    assert jnp.allclose(probs, ref_probs, atol=1e-5)
    assert jnp.allclose(loss, ref_loss, atol=1e-5)

    # Exercise a padded / multi-step configuration (non-divisible batch) to
    # prove the hardened tiling path is correct as well.
    big = 1000
    xb = jax.random.normal(k_x, (big, input_size), dtype=jnp.float32)
    yb = jax.random.randint(k_y, (big,), 0, num_classes, dtype=jnp.int32)
    pb = jax.block_until_ready(torch_model_forward(xb, w, b, y=None))
    lb = jax.block_until_ready(torch_model_forward(xb, w, b, y=yb))
    ref_lb = -jnp.mean(
        jnp.take_along_axis(jax.nn.log_softmax(xb @ w + b, axis=-1),
                            yb[:, None], axis=-1))
    assert pb.shape == (big, num_classes)
    assert jnp.allclose(pb, jax.nn.softmax(xb @ w + b, axis=-1), atol=1e-5)
    assert jnp.allclose(lb, ref_lb, atol=1e-5)

    print("KERNEL_OK")
</pallas_src>

<mosaic_0001>
module attributes {stable_mosaic.version = 11 : i64} {
  func.func @_softmax_kernel(%arg0: i32, %arg1: memref<8x32xf32, #tpu.memory_space<vmem>>, %arg2: memref<32x5xf32, #tpu.memory_space<vmem>>, %arg3: memref<1x5xf32, #tpu.memory_space<vmem>>, %arg4: memref<8x5xf32, #tpu.memory_space<vmem>>) attributes {dimension_semantics = [#tpu.dimension_semantics<parallel>], iteration_bounds = array<i64: 1>, scalar_prefetch = 0 : i64, scratch_operands = 0 : i64, tpu.core_type = #tpu.core_type<tc>, window_params = [{transform_indices = @transform_0, window_bounds = array<i64: 8, 32>}, {pipeline_mode = #tpu.pipeline_mode<synchronous>, transform_indices = @transform_1, window_bounds = array<i64: 32, 5>}, {pipeline_mode = #tpu.pipeline_mode<synchronous>, transform_indices = @transform_2, window_bounds = array<i64: 1, 5>}, {transform_indices = @transform_3, window_bounds = array<i64: 8, 5>}]} {
    %c0 = arith.constant 0 : index
    %c0_0 = arith.constant 0 : index
    %0 = vector.load %arg1[%c0, %c0_0] : memref<8x32xf32, #tpu.memory_space<vmem>>, vector<8x32xf32>
    %c0_1 = arith.constant 0 : index
    %c0_2 = arith.constant 0 : index
    %1 = vector.load %arg2[%c0_1, %c0_2] : memref<32x5xf32, #tpu.memory_space<vmem>>, vector<32x5xf32>
    %cst = arith.constant dense<0.000000e+00> : vector<8x5xf32>
    %2 = tpu.matmul %0, %1, %cst {dimension_numbers = #tpu.dot_dimension_numbers<[1], [0], [0], [1], [0, 0, 1, 1], [], []>} : vector<8x32xf32>, vector<32x5xf32>, vector<8x5xf32> -> vector<8x5xf32>
    %c0_3 = arith.constant 0 : index
    %c0_4 = arith.constant 0 : index
    %3 = vector.load %arg3[%c0_3, %c0_4] : memref<1x5xf32, #tpu.memory_space<vmem>>, vector<1x5xf32>
    %4 = vector.broadcast %3 : vector<1x5xf32> to vector<8x5xf32>
    %5 = arith.addf %2, %4 : vector<8x5xf32>
    %cst_5 = arith.constant dense<0xFF800000> : vector<8xf32>
    %6 = vector.multi_reduction <maximumf>, %5, %cst_5 [1] : vector<8x5xf32> to vector<8xf32>
    %7 = vector.shape_cast %6 : vector<8xf32> to vector<8x1xf32>
    %8 = vector.broadcast %7 : vector<8x1xf32> to vector<8x5xf32>
    %9 = arith.subf %5, %8 : vector<8x5xf32>
    %10 = math.exp %9 : vector<8x5xf32>
    %cst_6 = arith.constant dense<0.000000e+00> : vector<8xf32>
    %11 = vector.multi_reduction <add>, %10, %cst_6 [1] : vector<8x5xf32> to vector<8xf32>
    %12 = vector.shape_cast %11 : vector<8xf32> to vector<8x1xf32>
    %13 = vector.broadcast %12 : vector<8x1xf32> to vector<8x5xf32>
    %14 = arith.divf %10, %13 : vector<8x5xf32>
    %c0_7 = arith.constant 0 : index
    %c0_8 = arith.constant 0 : index
    %15 = vector.load %arg4[%c0_7, %c0_8] : memref<8x5xf32, #tpu.memory_space<vmem>>, vector<8x5xf32>
    tpu.vector_store %arg4[%c0_7, %c0_8], %14 {strides = array<i32>} : memref<8x5xf32, #tpu.memory_space<vmem>>, vector<8x5xf32>,
    return
  }
  func.func @transform_0(%arg0: i32) -> (i32, i32) {
    %c0_i32 = arith.constant 0 : i32
    %c0_i32_0 = arith.constant 0 : i32
    return %arg0, %c0_i32 : i32, i32
  }
  func.func @transform_1(%arg0: i32) -> (i32, i32) {
    %c0_i32 = arith.constant 0 : i32
    %c0_i32_0 = arith.constant 0 : i32
    %c0_i32_1 = arith.constant 0 : i32
    return %c0_i32, %c0_i32_0 : i32, i32
  }
  func.func @transform_2(%arg0: i32) -> (i32, i32) {
    %c0_i32 = arith.constant 0 : i32
    %c0_i32_0 = arith.constant 0 : i32
    %c0_i32_1 = arith.constant 0 : i32
    return %c0_i32, %c0_i32_0 : i32, i32
  }
  func.func @transform_3(%arg0: i32) -> (i32, i32) {
    %c0_i32 = arith.constant 0 : i32
    %c0_i32_0 = arith.constant 0 : i32
    return %arg0, %c0_i32 : i32, i32
  }
}

</mosaic_0001>

<bundles_post_ra>
// kernel: linear_softmax.1
= control target key start
LH: loop header
LB: loop body
LE: loop exit
PB: predicated region body
PF: predicated region fallthrough
CT: control target
= control target key end

     0   :  { %v184_v3 = vmov 0.0|0.0   ;;  %vm185_vm0 = vmmov 0   ;;  %v186_v6 = vmov 0.0   ;;  %s241_s0 = inlined_call_operand.vmem [shape: f32[8,32], index: 0, kind: input, shape index: {}]   ;;  %s242_s1 = inlined_call_operand.vmem [shape: f32[32,5], index: 1, kind: input, shape index: {}]   ;;  %s243_s2 = inlined_call_operand.vmem [shape: f32[1,5], index: 2, kind: input, shape index: {}]   ;;  %s244_s3 = inlined_call_operand.hbm [shape: f32[8,5], index: 3, kind: output, shape index: {}]  }
   0x1   :  { %v16_v0 = vld [vmem:[%s242_s1] sm:$0xff]  ;;  %v17_v1 = vld [vmem:[%s242_s1 + $0x8] sm:$0xff]  ;;  %v18_v2 = vld [vmem:[%s242_s1 + $0x10] sm:$0xff]  ;;  %146 = vmatprep.subr.bf16.mxu0 %v184_v3  ;;  %143 = vmatprep.mubr.msk.f32.mxu0 %vm185_vm0, %v186_v6 }
   0x2   :  { %v147_v4 = vpack.c.bf16 %v17_v1, %v16_v0  ;;  %v19_v5 = vld [vmem:[%s242_s1 + $0x18] sm:$0xff] }
   0x3   :  { %8 = vsyncpa [#allocation3], 0  ;;  %v150_v7 = vpack.c.bf16 %v19_v5, %v18_v2  ;;  %v15_v8 = vld [vmem:[%s241_s0] sm:$0xff]  ;;  %vm27_vm1 = vcmask 261120   ;;  %vm101_vm2 = vcmask 39936   ;;  %s187_s0 = smov [#allocation2]  }
   0x4   :  { %148 = vmatpush3.bf16.msra.mxu0 %v147_v4  ;;  %v128_v9 = vld [vmem:[%s243_s2] ss:$0 sm:$0xff]  ;;  %s120_s1 = sshll.u32 %s187_s0, 4  ;;  %s121_s1 = int_to_ptr.vmem [resolvable:$true] %s120_s1 }
   0x5   :  { %149 = vmatprep.subr.bf16.mxu0 %v184_v3  ;;  %s160_s2 = scalar_lea.vmem %s121_s1, 128  ;;  %p165_p1 = scmp.lt.s32.totalorder %s121_s1, %s121_s1 }
   0x6   :  { %p161_p0 = scmp.ne.s32.totalorder %s121_s1, %s160_s2  ;;  %p166_p2 = scmp.lt.s32.totalorder %s160_s2, %s160_s2 }
   0x8   :  { %151 = vmatpush3.bf16.msra.mxu0 %v150_v7  ;;  %p167_p3 = por %p166_p2, %p165_p1 }
   0xa   :  { %p168_p4 = pnand %p167_p3, %p161_p0 }
   0xb   :  { %144 = vmatmul.mubr.msk.f32.vlgmr.msra.gmra.mrb[0].mxu0 %vm27_vm1, %v15_v8 }
  0xde   :  { %v97_v10 = vpop.f32.mrb[0].mxu0 }
  0xdf   :  { %v98_v11 = vadd.f32 %v128_v9, %v97_v10  ;;  %v145_v12 = vpop.f32.mrb[1].mxu0 }
  0xe1   :  { %v102_v13 = vsel %vm101_vm2, %v98_v11, -inf }
  0xe2   :  { %103 = vmax.xlane.f32.xlu0 %v102_v13 }
 0x16f   :  { %v104_v14 = vpop.xlane.xlu0 %103 }
 0x170   :  { %v105_v15 = vsub.f32 %v98_v11, %v104_v14 }
 0x172   :  { %v106_v16 = vmul.f32 1.442695, %v105_v15 }
 0x174   :  { %156 = vpow2.f32 %v106_v16 }
 0x17e   :  { %v157_v17 = vpop.eup %156 }
 0x17f   :  { %v108_v18 = vsel %vm101_vm2, %v157_v17, 0.0 }
 0x180   :  { %109 = vadd.xlane.f32.xlu0 %v108_v18 }
 0x20d   :  { %v110_v19 = vpop.xlane.xlu0 %109 }
 0x20e   :  { %158 = vrcp.f32 %v110_v19 }
 0x218   :  { %v159_v20 = vpop.eup %158 }
 0x219   :  { %v112_v21 = vmul.f32 %v159_v20, %v157_v17 }
 0x21b   :  { %113 = vst.msk [vmem:[#allocation2] sm:$0xff] %vm101_vm2, %v112_v21 }
 0x21c   :  { %171 = shalt.err (!%p168_p4)
}
 0x21d   :  { %s172_s26 = scalar_lea.hbm %s244_s3, 128 }
 0x21e   :  { %p173_p5 = scmp.ne.s32.totalorder %s244_s3, %s172_s26  ;;  %p176_p6 = scmp.lt.u32.totalorder %s172_s26, %s244_s3 }
 0x220   :  { %p178_p7 = pnand %p176_p6, %p173_p5 }
 0x222   :  { %181 = shalt.err (!%p178_p7)
}
 0x223   :  { %123 = dma.vmem_to_hbm [thread:$0]  %s121_s1, 128, %s244_s3, [#allocation3]  }
 0x224   :  { %182 = dma.done.wait [#allocation3], 128  }
 0x225   :  { %183 = vsyncadd [#allocation3], 4294967168 }
 0x226   :  { %127 = vsyncpa [#allocation3], 1 }

</bundles_post_ra>
